<compile_context>
chip_gen: v6e
topology: v6e:2x2x1
jax: 0.10.0
libtpu: 0.0.40
codegen_flags: <defaults>
</compile_context>

<pallas_src>
import functools

import jax
import jax.numpy as jnp
from jax import lax
from jax.experimental import pallas as pl
from jax.experimental.pallas import tpu as pltpu


def _round_up(n, m):
    return ((n + m - 1) // m) * m


def _cdiv(a, b):
    return (a + b - 1) // b


def _pad_to(a, shape):
    pads = [(0, t - s) for s, t in zip(a.shape, shape)]
    if all(p == (0, 0) for p in pads):
        return a
    return jnp.pad(a, pads)


def _bspec(shape, index_map, mode=None):
    if mode is None:
        return pl.BlockSpec(shape, index_map)
    return pl.BlockSpec(shape, index_map, pipeline_mode=mode)


def _tpu_config():
    """Best-effort hardware query; conservative (v7x-like) fallbacks."""
    kind = ""
    try:
        kind = jax.devices()[0].device_kind.lower()
    except Exception:
        pass
    try:
        vmem_cap = int(pltpu.get_tpu_info().vmem_capacity_bytes)
    except Exception:
        vmem_cap = 64 << 20
    is_v5e = ("v5 lite" in kind) or ("v5e" in kind) or ("v5lite" in kind)
    is_v6 = "v6" in kind
    is_v7 = "v7" in kind
    return dict(
        vmem_cap=vmem_cap,
        mxu_align=128 if is_v5e else 256,          # MXU tile width (K/N granularity)
        num_tc=2 if is_v7 else 1,                  # TensorCores sharing the parallel grid axis
        tb_resident=256,
        tb_stream=768 if is_v6 else (384 if is_v7 else 256),  # streaming roofline knee
        resident_budget=int(0.4 * vmem_cap),       # single-buffered weight residency budget
        inner_chunk=512,                           # bound on the f32 `h` intermediate width
    )


# ----------------------------------------------------------------------------- kernel


def _mlp_kernel(x_ref, w1_ref, b1_ref, w2_ref, b2_ref, o_ref, acc_ref,
                *, n_inner, th_inner):
    # grid = (batch_tiles, hidden_chunks); axis 1 is the reduction over hidden chunks.
    k = pl.program_id(1)

    @pl.when(k == 0)
    def _init():
        # Seed the accumulator with b2: finalize becomes a plain cast + store.
        acc_ref[...] = jnp.broadcast_to(b2_ref[...], acc_ref.shape)

    x = x_ref[...]

    def hidden_chunk(j):
        if isinstance(j, int):
            start = j * th_inner
        else:
            start = pl.multiple_of(j * th_inner, th_inner)
        w1c = w1_ref[:, pl.ds(start, th_inner)]
        b1c = b1_ref[:, pl.ds(start, th_inner)]
        w2c = w2_ref[pl.ds(start, th_inner), :]
        # relu(x @ W1_chunk + b1_chunk) with f32 accumulation on the MXU
        h = jnp.dot(x, w1c, preferred_element_type=jnp.float32)
        h = jnp.maximum(h + b1c, 0.0)  # ReLU (inplace=True has no functional effect)
        acc_ref[...] += jnp.dot(h.astype(w2c.dtype), w2c,
                                preferred_element_type=jnp.float32)

    if n_inner == 1:
        hidden_chunk(0)
    else:
        # Sub-tile the (possibly resident) hidden dim so the f32 `h` stays bounded.
        lax.fori_loop(0, n_inner, lambda j, c: (hidden_chunk(j), c)[1], 0,
                      unroll=(n_inner <= 8))

    @pl.when(k == pl.num_programs(1) - 1)
    def _finalize():
        o_ref[...] = acc_ref[...].astype(o_ref.dtype)


# ----------------------------------------------------------------------------- wrapper


def prepare_mlp_params(w1, b1, w2, b2, *, compute_dtype=jnp.bfloat16, th=None):
    """One-time weight prep: cast to compute dtype, lane-pad, pick hidden-dim tiling.

    w1: [D_in, H]   (transpose of PyTorch nn.Linear's [out, in])
    b1: [H] or [1, H]
    w2: [H, D_out]
    b2: [D_out] or [1, D_out]
    """
    cfg = _tpu_config()
    D_in, H = w1.shape
    H2, D_out = w2.shape
    assert H2 == H, "w1/w2 hidden dims must match"
    itemsize = jnp.dtype(compute_dtype).itemsize

    D_in_p = _round_up(D_in, 128)
    D_out_p = _round_up(D_out, 128)
    H_128 = _round_up(H, 128)

    # Residency decision (weights single-buffered via Buffered(1) when resident).
    w_bytes = (D_in_p * H_128 + H_128 * D_out_p) * itemsize
    if th is None:
        resident = w_bytes <= cfg["resident_budget"]
    else:
        resident = _round_up(th, 128) >= H_128

    if resident:
        th_eff, n_k, H_p = H_128, 1, H_128
    else:
        target = _round_up(th if th is not None else cfg["inner_chunk"], cfg["mxu_align"])
        n_k = max(1, _cdiv(H_128, target))
        th_eff = _round_up(_cdiv(H_128, n_k), cfg["mxu_align"])  # divides H_p by construction
        H_p = n_k * th_eff

    # In-kernel sub-tiling of the hidden dim bounds the f32 `h` intermediate at ~tb*512*6 B.
    th_inner = th_eff
    if th_eff > cfg["inner_chunk"]:
        for cand in (512, 384, 256, 128):
            if th_eff % cand == 0:
                th_inner = cand
                break
    n_inner = th_eff // th_inner

    w1p = _pad_to(w1.astype(compute_dtype), (D_in_p, H_p))
    b1p = _pad_to(jnp.asarray(b1, jnp.float32).reshape(1, H), (1, H_p))
    w2p = _pad_to(w2.astype(compute_dtype), (H_p, D_out_p))
    b2p = _pad_to(jnp.asarray(b2, jnp.float32).reshape(1, D_out), (1, D_out_p))

    return dict(w1=w1p, b1=b1p, w2=w2p, b2=b2p,
                dims=(D_in, H, D_out), padded=(D_in_p, H_p, D_out_p),
                th=th_eff, n_k=n_k, th_inner=th_inner, n_inner=n_inner,
                resident=resident, compute_dtype=compute_dtype, cfg=cfg)


def mlp_forward(x, params, *, tb=None, out_dtype=None):
    """Fused MLP forward: relu(x @ w1 + b1) @ w2 + b2 with pre-prepared params."""
    cfg = params["cfg"]
    compute_dtype = params["compute_dtype"]
    D_in, H, D_out = params["dims"]
    D_in_p, H_p, D_out_p = params["padded"]
    th, n_k = params["th"], params["n_k"]
    th_inner, n_inner = params["th_inner"], params["n_inner"]
    itemsize = jnp.dtype(compute_dtype).itemsize
    if out_dtype is None:
        out_dtype = x.dtype
    out_itemsize = jnp.dtype(out_dtype).itemsize

    orig_shape = x.shape
    assert orig_shape[-1] == D_in, "last dim of x must equal input_size"
    x2 = x.reshape(-1, D_in)
    B = x2.shape[0]

    # ---- batch tile -------------------------------------------------------
    sub_mult = {4: 8, 2: 16, 1: 32}.get(itemsize, 8)     # sublane-pack multiple per dtype
    if tb is None:
        tb = cfg["tb_resident"] if n_k == 1 else cfg["tb_stream"]
    tb_eff = max(sub_mult, _round_up(min(tb, _round_up(B, sub_mult)), sub_mult))
    Bp = _round_up(B, tb_eff)
    # Dual-TC parts: make sure the parallel batch axis has >= 2 tiles when B allows it.
    if cfg["num_tc"] > 1 and Bp // tb_eff == 1 and B > sub_mult:
        half = _round_up(_cdiv(_round_up(B, sub_mult), 2), max(16, sub_mult))
        if sub_mult <= half < tb_eff:
            tb_eff = half
            Bp = _round_up(B, tb_eff)

    # ---- x padding (skipped when already aligned) --------------------------
    xp = x2.astype(compute_dtype)
    if Bp != B or D_in_p != D_in:
        xp = jnp.pad(xp, ((0, Bp - B), (0, D_in_p - D_in)))

    grid = (Bp // tb_eff, n_k)

    # ---- VMEM budget (incl. f32 h intermediate + its cast) -----------------
    wbuf = 1 if n_k == 1 else 2
    vmem_needed = (
        2 * tb_eff * D_in_p * itemsize                      # x tiles (double buffered)
        + wbuf * (D_in_p * th + th * D_out_p) * itemsize    # W1/W2 chunks
        + wbuf * th * 4 + D_out_p * 4                       # b1 chunk, b2 (Buffered(1))
        + 2 * tb_eff * D_out_p * out_itemsize               # output tiles
        + tb_eff * D_out_p * 4                              # f32 accumulator scratch
        + tb_eff * th_inner * (4 + itemsize)                # f32 h + low-precision cast
        + (4 << 20)                                         # headroom
    )
    vmem_limit = int(min(max(vmem_needed, 32 << 20), cfg["vmem_cap"]))

    cost = pl.CostEstimate(
        flops=int(2 * B * (D_in * H + H * D_out)),
        transcendentals=0,
        bytes_accessed=int(B * D_in * itemsize
                           + (D_in * H + H * D_out) * itemsize
                           + (H + D_out) * 4
                           + B * D_out * out_itemsize),
    )

    wmode = pl.Buffered(1) if n_k == 1 else None   # grid-invariant when not streaming
    kernel = functools.partial(_mlp_kernel, n_inner=n_inner, th_inner=th_inner)

    out_p = pl.pallas_call(
        kernel,
        out_shape=jax.ShapeDtypeStruct((Bp, D_out_p), out_dtype),
        grid_spec=pltpu.PrefetchScalarGridSpec(
            num_scalar_prefetch=0,
            grid=grid,
            in_specs=[
                _bspec((tb_eff, D_in_p), lambda i, k: (i, 0)),            # x batch tile
                _bspec((D_in_p, th), lambda i, k: (0, k), wmode),         # W1 hidden chunk
                _bspec((1, th), lambda i, k: (0, k), wmode),              # b1 hidden chunk
                _bspec((th, D_out_p), lambda i, k: (k, 0), wmode),        # W2 hidden chunk
                _bspec((1, D_out_p), lambda i, k: (0, 0), pl.Buffered(1)),  # b2 (invariant)
            ],
            out_specs=pl.BlockSpec((tb_eff, D_out_p), lambda i, k: (i, 0)),
            scratch_shapes=[pltpu.VMEM((tb_eff, D_out_p), jnp.float32)],
        ),
        compiler_params=pltpu.CompilerParams(
            dimension_semantics=("parallel", "arbitrary"),
            vmem_limit_bytes=vmem_limit,
        ),
        cost_estimate=cost,
    )(xp, params["w1"], params["b1"], params["w2"], params["b2"])

    out = out_p[:B, :D_out]
    return out.reshape(*orig_shape[:-1], D_out)


def init_mlp_params(key, input_size, hidden_size, output_size, dtype=jnp.float32):
    """Deterministic init mimicking nn.Linear's U(-1/sqrt(fan_in), 1/sqrt(fan_in))."""
    k1, k2, k3, k4 = jax.random.split(key, 4)
    bound1 = 1.0 / jnp.sqrt(jnp.float32(input_size))
    bound2 = 1.0 / jnp.sqrt(jnp.float32(hidden_size))
    # stored as [in, out] (transpose of PyTorch's [out, in])
    w1 = jax.random.uniform(k1, (input_size, hidden_size), dtype, -bound1, bound1)
    b1 = jax.random.uniform(k2, (1, hidden_size), dtype, -bound1, bound1)
    w2 = jax.random.uniform(k3, (hidden_size, output_size), dtype, -bound2, bound2)
    b2 = jax.random.uniform(k4, (1, output_size), dtype, -bound2, bound2)
    return w1, b1, w2, b2


if __name__ == "__main__":
    # small shapes consistent with the module's forward: hidden_states [batch, input_size]
    batch, input_size, hidden_size, output_size = 16, 32, 32, 16

    key = jax.random.PRNGKey(0)
    kx, kp = jax.random.split(key)
    x = jax.random.normal(kx, (batch, input_size), jnp.float32)
    w1, b1, w2, b2 = init_mlp_params(kp, input_size, hidden_size, output_size)

    # plain-JAX f32 reference
    ref = jnp.maximum(x @ w1 + b1, 0.0) @ w2 + b2

    # exact (f32 compute) path -- weights prepared once, reused across calls
    params_f32 = prepare_mlp_params(w1, b1, w2, b2, compute_dtype=jnp.float32)
    out_f32 = jax.block_until_ready(mlp_forward(x, params_f32))
    assert out_f32.shape == (batch, output_size)
    assert jnp.allclose(out_f32, ref, atol=1e-5, rtol=1e-5)

    # fast path: bf16 matmul inputs, f32 accumulation
    params_bf16 = prepare_mlp_params(w1, b1, w2, b2, compute_dtype=jnp.bfloat16)
    out_bf16 = jax.block_until_ready(mlp_forward(x, params_bf16))
    xb, w1b, w2b = (a.astype(jnp.bfloat16) for a in (x, w1, w2))
    hb = jnp.maximum(jnp.dot(xb, w1b, preferred_element_type=jnp.float32) + b1, 0.0)
    ref_b = jnp.dot(hb.astype(jnp.bfloat16), w2b,
                    preferred_element_type=jnp.float32) + b2
    assert out_bf16.shape == (batch, output_size)
    assert jnp.allclose(out_bf16, ref_b, atol=2e-3, rtol=2e-3)   # vs bf16-emulated ref
    assert jnp.allclose(out_bf16, ref, atol=5e-2, rtol=5e-2)     # vs f32 ref (sanity)

    print("KERNEL_OK")
</pallas_src>

<mosaic_0001>
module attributes {stable_mosaic.version = 11 : i64} {
  func.func @_mlp_kernel(%arg0: i32, %arg1: i32, %arg2: memref<16x128xf32, #tpu.memory_space<vmem>>, %arg3: memref<128x128xf32, #tpu.memory_space<vmem>>, %arg4: memref<1x128xf32, #tpu.memory_space<vmem>>, %arg5: memref<128x128xf32, #tpu.memory_space<vmem>>, %arg6: memref<1x128xf32, #tpu.memory_space<vmem>>, %arg7: memref<16x128xf32, #tpu.memory_space<vmem>>, %arg8: memref<16x128xf32, #tpu.memory_space<vmem>>) attributes {dimension_semantics = [#tpu.dimension_semantics<parallel>, #tpu.dimension_semantics<arbitrary>], iteration_bounds = array<i64: 1, 1>, scalar_prefetch = 0 : i64, scratch_operands = 1 : i64, tpu.core_type = #tpu.core_type<tc>, window_params = [{transform_indices = @transform_0, window_bounds = array<i64: 16, 128>}, {pipeline_mode = #tpu.pipeline_mode<synchronous>, transform_indices = @transform_1, window_bounds = array<i64: 128, 128>}, {pipeline_mode = #tpu.pipeline_mode<synchronous>, transform_indices = @transform_2, window_bounds = array<i64: 1, 128>}, {pipeline_mode = #tpu.pipeline_mode<synchronous>, transform_indices = @transform_3, window_bounds = array<i64: 128, 128>}, {pipeline_mode = #tpu.pipeline_mode<synchronous>, transform_indices = @transform_4, window_bounds = array<i64: 1, 128>}, {transform_indices = @transform_5, window_bounds = array<i64: 16, 128>}]} {
    %c0_i32 = arith.constant 0 : i32
    %0 = arith.cmpi eq, %arg1, %c0_i32 : i32
    %1 = arith.extui %0 : i1 to i32
    %c0_i32_0 = arith.constant 0 : i32
    %2 = arith.cmpi ne, %1, %c0_i32_0 : i32
    scf.if %2 {
      %c0_16 = arith.constant 0 : index
      %c0_17 = arith.constant 0 : index
      %19 = vector.load %arg6[%c0_16, %c0_17] : memref<1x128xf32, #tpu.memory_space<vmem>>, vector<1x128xf32>
      %20 = vector.shape_cast %19 : vector<1x128xf32> to vector<1x128xf32>
      %21 = vector.broadcast %20 : vector<1x128xf32> to vector<16x128xf32>
      %c0_18 = arith.constant 0 : index
      %c0_19 = arith.constant 0 : index
      %22 = vector.load %arg8[%c0_18, %c0_19] : memref<16x128xf32, #tpu.memory_space<vmem>>, vector<16x128xf32>
      tpu.vector_store %arg8[%c0_18, %c0_19], %21 {strides = array<i32>} : memref<16x128xf32, #tpu.memory_space<vmem>>, vector<16x128xf32>,
    } else {
    }
    %c0 = arith.constant 0 : index
    %c0_1 = arith.constant 0 : index
    %3 = vector.load %arg2[%c0, %c0_1] : memref<16x128xf32, #tpu.memory_space<vmem>>, vector<16x128xf32>
    %c0_2 = arith.constant 0 : index
    %c0_3 = arith.constant 0 : index
    %4 = vector.load %arg3[%c0_2, %c0_3] : memref<128x128xf32, #tpu.memory_space<vmem>>, vector<128x128xf32>
    %c0_4 = arith.constant 0 : index
    %c0_5 = arith.constant 0 : index
    %5 = vector.load %arg4[%c0_4, %c0_5] : memref<1x128xf32, #tpu.memory_space<vmem>>, vector<1x128xf32>
    %c0_6 = arith.constant 0 : index
    %c0_7 = arith.constant 0 : index
    %6 = vector.load %arg5[%c0_6, %c0_7] : memref<128x128xf32, #tpu.memory_space<vmem>>, vector<128x128xf32>
    %cst = arith.constant dense<0.000000e+00> : vector<16x128xf32>
    %7 = tpu.matmul %3, %4, %cst {dimension_numbers = #tpu.dot_dimension_numbers<[1], [0], [0], [1], [0, 0, 1, 1], [], []>} : vector<16x128xf32>, vector<128x128xf32>, vector<16x128xf32> -> vector<16x128xf32>
    %8 = vector.broadcast %5 : vector<1x128xf32> to vector<16x128xf32>
    %9 = arith.addf %7, %8 : vector<16x128xf32>
    %cst_8 = arith.constant 0.000000e+00 : f32
    %10 = vector.broadcast %cst_8 : f32 to vector<16x128xf32>
    %11 = arith.maximumf %9, %10 : vector<16x128xf32>
    %c0_9 = arith.constant 0 : index
    %c0_10 = arith.constant 0 : index
    %12 = vector.load %arg8[%c0_9, %c0_10] : memref<16x128xf32, #tpu.memory_space<vmem>>, vector<16x128xf32>
    %cst_11 = arith.constant dense<0.000000e+00> : vector<16x128xf32>
    %13 = tpu.matmul %11, %6, %cst_11 {dimension_numbers = #tpu.dot_dimension_numbers<[1], [0], [0], [1], [0, 0, 1, 1], [], []>} : vector<16x128xf32>, vector<128x128xf32>, vector<16x128xf32> -> vector<16x128xf32>
    %14 = arith.addf %12, %13 : vector<16x128xf32>
    %c0_12 = arith.constant 0 : index
    %c0_13 = arith.constant 0 : index
    %15 = vector.load %arg8[%c0_12, %c0_13] : memref<16x128xf32, #tpu.memory_space<vmem>>, vector<16x128xf32>
    tpu.vector_store %arg8[%c0_12, %c0_13], %14 {strides = array<i32>} : memref<16x128xf32, #tpu.memory_space<vmem>>, vector<16x128xf32>,
    %c0_i32_14 = arith.constant 0 : i32
    %16 = arith.cmpi eq, %arg1, %c0_i32_14 : i32
    %17 = arith.extui %16 : i1 to i32
    %c0_i32_15 = arith.constant 0 : i32
    %18 = arith.cmpi ne, %17, %c0_i32_15 : i32
    scf.if %18 {
      %c0_16 = arith.constant 0 : index
      %c0_17 = arith.constant 0 : index
      %19 = vector.load %arg8[%c0_16, %c0_17] : memref<16x128xf32, #tpu.memory_space<vmem>>, vector<16x128xf32>
      %c0_18 = arith.constant 0 : index
      %c0_19 = arith.constant 0 : index
      %20 = vector.load %arg7[%c0_18, %c0_19] : memref<16x128xf32, #tpu.memory_space<vmem>>, vector<16x128xf32>
      tpu.vector_store %arg7[%c0_18, %c0_19], %19 {strides = array<i32>} : memref<16x128xf32, #tpu.memory_space<vmem>>, vector<16x128xf32>,
    } else {
    }
    return
  }
  func.func @transform_0(%arg0: i32, %arg1: i32) -> (i32, i32) {
    %c0_i32 = arith.constant 0 : i32
    %c0_i32_0 = arith.constant 0 : i32
    return %arg0, %c0_i32 : i32, i32
  }
  func.func @transform_1(%arg0: i32, %arg1: i32) -> (i32, i32) {
    %c0_i32 = arith.constant 0 : i32
    %c0_i32_0 = arith.constant 0 : i32
    return %c0_i32, %arg1 : i32, i32
  }
  func.func @transform_2(%arg0: i32, %arg1: i32) -> (i32, i32) {
    %c0_i32 = arith.constant 0 : i32
    %c0_i32_0 = arith.constant 0 : i32
    return %c0_i32, %arg1 : i32, i32
  }
  func.func @transform_3(%arg0: i32, %arg1: i32) -> (i32, i32) {
    %c0_i32 = arith.constant 0 : i32
    %c0_i32_0 = arith.constant 0 : i32
    return %arg1, %c0_i32 : i32, i32
  }
  func.func @transform_4(%arg0: i32, %arg1: i32) -> (i32, i32) {
    %c0_i32 = arith.constant 0 : i32
    %c0_i32_0 = arith.constant 0 : i32
    %c0_i32_1 = arith.constant 0 : i32
    return %c0_i32, %c0_i32_0 : i32, i32
  }
  func.func @transform_5(%arg0: i32, %arg1: i32) -> (i32, i32) {
    %c0_i32 = arith.constant 0 : i32
    %c0_i32_0 = arith.constant 0 : i32
    return %arg0, %c0_i32 : i32, i32
  }
}

</mosaic_0001>

<bundles_post_ra>
// kernel: tpu_custom_call.1
= control target key start
LH: loop header
LB: loop body
LE: loop exit
PB: predicated region body
PF: predicated region fallthrough
CT: control target
= control target key end

     0   :  { %10 = vsyncpa [#allocation4], 0  ;;  %s565_s0 = inlined_call_operand.hbm [shape: f32[16,128], index: 0, kind: input, shape index: {}]   ;;  %s566_s1 = inlined_call_operand.hbm [shape: f32[128,128], index: 1, kind: input, shape index: {}]   ;;  %s567_s2 = inlined_call_operand.vmem [shape: f32[1,128], index: 2, kind: input, shape index: {}]   ;;  %s568_s3 = inlined_call_operand.hbm [shape: f32[128,128], index: 3, kind: input, shape index: {}]   ;;  %s569_s4 = inlined_call_operand.vmem [shape: f32[1,128], index: 4, kind: input, shape index: {}]   ;;  %s570_s5 = inlined_call_operand.hbm [shape: f32[16,128], index: 5, kind: output, shape index: {}]  }
   0x1   :  { %11 = vsyncpa [#allocation7], 0 }
   0x2   :  { %12 = vsyncpa [#allocation5], 0  ;;  %s499_s18 = smov [#allocation6]   ;;  %s500_s20 = smov [#allocation3]  }
   0x3   :  { %s30_s19 = sshll.u32 %s499_s18, 4  ;;  %s18_s21 = sshll.u32 %s500_s20, 4  ;;  %s31_s19 = int_to_ptr.vmem [resolvable:$true] %s30_s19  ;;  %s19_s21 = int_to_ptr.vmem [resolvable:$true] %s18_s21 }
   0x4   :  { %s421_s22 = scalar_lea.vmem %s31_s19, 2048  ;;  %p426_p1 = scmp.lt.s32.totalorder %s31_s19, %s31_s19 }
   0x5   :  { %p422_p0 = scmp.ne.s32.totalorder %s31_s19, %s421_s22  ;;  %p427_p2 = scmp.lt.s32.totalorder %s421_s22, %s421_s22 }
   0x7   :  { %p428_p3 = por %p427_p2, %p426_p1 }
   0x9   :  { %p429_p4 = pnand %p428_p3, %p422_p0 }
   0xb   :  { %432 = shalt.err (!%p429_p4)
}
   0xc   :  { %s501_s23 = smov 128   ;;  %s502_s24 = smov 8  }
   0xd   :  { %36 = dma.hbm_to_vmem [thread:$0]  %s566_s1, 2048, %s31_s19, [#allocation7], %s501_s23, %s501_s23, %s502_s24  }
   0xe   :  { %s441_s27 = scalar_lea.vmem %s19_s21, 256  ;;  %p446_p6 = scmp.lt.s32.totalorder %s19_s21, %s19_s21 }
   0xf   :  { %p442_p5 = scmp.ne.s32.totalorder %s19_s21, %s441_s27  ;;  %p447_p7 = scmp.lt.s32.totalorder %s441_s27, %s441_s27 }
  0x11   :  { %p448_p8 = por %p447_p7, %p446_p6 }
  0x13   :  { %p449_p9 = pnand %p448_p8, %p442_p5 }
  0x15   :  { %452 = shalt.err (!%p449_p9)
}
  0x16   :  { %24 = dma.hbm_to_vmem [thread:$0]  %s565_s0, 256, %s19_s21, [#allocation4], %s501_s23, %s501_s23, %s502_s24  }
  0x17   :  { %s503_s30 = smov [#allocation8]  }
  0x18   :  { %s44_s6 = sshll.u32 %s503_s30, 4  ;;  %s45_s6 = int_to_ptr.vmem [resolvable:$true] %s44_s6 }
  0x19   :  { %s461_s7 = scalar_lea.vmem %s45_s6, 2048  ;;  %p466_p11 = scmp.lt.s32.totalorder %s45_s6, %s45_s6 }
  0x1a   :  { %p462_p10 = scmp.ne.s32.totalorder %s45_s6, %s461_s7  ;;  %p467_p12 = scmp.lt.s32.totalorder %s461_s7, %s461_s7 }
  0x1c   :  { %p468_p13 = por %p467_p12, %p466_p11 }
  0x1e   :  { %p469_p0 = pnand %p468_p13, %p462_p10 }
  0x20   :  { %472 = shalt.err (!%p469_p0)
}
  0x21   :  { %50 = dma.hbm_to_vmem [thread:$0]  %s568_s3, 2048, %s45_s6, [#allocation7], %s501_s23, %s501_s23, %s502_s24  }
  0x22   :  { %493 = dma.done.wait [#allocation4], 256  }
  0x23   :  { %494 = vsyncadd [#allocation4], 4294967040 }
  0x24   :  { %495 = dma.done.wait [#allocation7], 4096  }
  0x25   :  { %496 = vsyncadd [#allocation7], 4294963200  ;;  %v92_v0 = vld [vmem:[#allocation6 + $0x78] sm:$0xff]  ;;  %v91_v1 = vld [vmem:[#allocation6 + $0x70] sm:$0xff]  ;;  %s504_s11 = smov [#allocation9]  }
  0x26   :  { %337 = vmatprep.subr.mxu0 %v92_v0  ;;  %v90_v2 = vld [vmem:[#allocation6 + $0x68] sm:$0xff]  ;;  %v89_v3 = vld [vmem:[#allocation6 + $0x60] sm:$0xff]  ;;  %v75_v4 = vld [vmem:[#allocation3] sm:$0xff]  ;;  %s286_s12 = sshll.u32 %s504_s11, 4  ;;  %s287_s12 = int_to_ptr.vmem [resolvable:$true] %s286_s12 }
  0x27   :  { %338 = vmatpush3.msra.mxu0 %v92_v0  ;;  %v88_v5 = vld [vmem:[#allocation6 + $0x58] sm:$0xff]  ;;  %369 = vmatprep.mubr.f32.mxu0 %v75_v4  ;;  %v108_v7 = vld [vmem:[#allocation8 + $0x70] sm:$0xff]  ;;  %v107_v9 = vld [vmem:[#allocation8 + $0x68] sm:$0xff]  ;;  %p478_p2 = scmp.lt.s32.totalorder %s287_s12, %s287_s12 }
  0x28   :  { %339 = vmatprep.subr.mxu0 %v91_v1  ;;  %v109_v6 = vld [vmem:[#allocation8 + $0x78] sm:$0xff]  ;;  %v87_v8 = vld [vmem:[#allocation6 + $0x50] sm:$0xff]  ;;  %v86_v10 = vld [vmem:[#allocation6 + $0x48] sm:$0xff] }
  0x29   :  { %340 = vmatpush3.msra.mxu0 %v91_v1  ;;  %372 = vmatprep.subr.mxu1 %v109_v6  ;;  %v106_v11 = vld [vmem:[#allocation8 + $0x60] sm:$0xff]  ;;  %v105_v13 = vld [vmem:[#allocation8 + $0x58] sm:$0xff]  ;;  %v104_v15 = vld [vmem:[#allocation8 + $0x50] sm:$0xff] }
  0x2a   :  { %341 = vmatprep.subr.mxu0 %v90_v2  ;;  %373 = vmatpush3.msra.mxu1 %v109_v6  ;;  %v85_v12 = vld [vmem:[#allocation6 + $0x40] sm:$0xff]  ;;  %v84_v14 = vld [vmem:[#allocation6 + $0x38] sm:$0xff]  ;;  %v83_v16 = vld [vmem:[#allocation6 + $0x30] sm:$0xff] }
  0x2b   :  { %342 = vmatpush3.msra.mxu0 %v90_v2  ;;  %374 = vmatprep.subr.mxu1 %v108_v7  ;;  %v103_v17 = vld [vmem:[#allocation8 + $0x48] sm:$0xff]  ;;  %v102_v19 = vld [vmem:[#allocation8 + $0x40] sm:$0xff]  ;;  %v101_v21 = vld [vmem:[#allocation8 + $0x38] sm:$0xff] }
  0x2c   :  { %343 = vmatprep.subr.mxu0 %v89_v3  ;;  %375 = vmatpush3.msra.mxu1 %v108_v7  ;;  %v82_v18 = vld [vmem:[#allocation6 + $0x28] sm:$0xff]  ;;  %v81_v20 = vld [vmem:[#allocation6 + $0x20] sm:$0xff]  ;;  %v80_v22 = vld [vmem:[#allocation6 + $0x18] sm:$0xff] }
  0x2d   :  { %344 = vmatpush3.msra.mxu0 %v89_v3  ;;  %376 = vmatprep.subr.mxu1 %v107_v9  ;;  %v100_v23 = vld [vmem:[#allocation8 + $0x30] sm:$0xff]  ;;  %v99_v25 = vld [vmem:[#allocation8 + $0x28] sm:$0xff]  ;;  %v98_v27 = vld [vmem:[#allocation8 + $0x20] sm:$0xff] }
  0x2e   :  { %345 = vmatprep.subr.mxu0 %v88_v5  ;;  %377 = vmatpush3.msra.mxu1 %v107_v9  ;;  %v79_v24 = vld [vmem:[#allocation6 + $0x10] sm:$0xff]  ;;  %v78_v26 = vld [vmem:[#allocation6 + $0x8] sm:$0xff]  ;;  %v77_v28 = vld [vmem:[#allocation6] sm:$0xff] }
  0x2f   :  { %346 = vmatpush3.msra.mxu0 %v88_v5  ;;  %378 = vmatprep.subr.mxu1 %v106_v11  ;;  %v76_v29 = vld [vmem:[#allocation3 + $0x8] sm:$0xff]  ;;  %v96_v31 = vld [vmem:[#allocation8 + $0x10] sm:$0xff]  ;;  %v95_v32 = vld [vmem:[#allocation8 + $0x8] sm:$0xff] }
  0x30   :  { %347 = vmatprep.subr.mxu0 %v87_v8  ;;  %379 = vmatpush3.msra.mxu1 %v106_v11  ;;  %v97_v30 = vld [vmem:[#allocation8 + $0x18] sm:$0xff]  ;;  %v94_v33 = vld [vmem:[#allocation8] sm:$0xff]  ;;  %v300_v34 = vld [vmem:[%s567_s2] ss:$0 sm:$0xff]  ;;  %s473_s2 = scalar_lea.vmem %s287_s12, 256 }
  0x31   :  { %348 = vmatpush3.msra.mxu0 %v87_v8  ;;  %380 = vmatprep.subr.mxu1 %v105_v13  ;;  %v299_v41 = vld [vmem:[%s569_s4] ss:$0 sm:$0xff]  ;;  %p474_p1 = scmp.ne.s32.totalorder %s287_s12, %s473_s2  ;;  %p479_p3 = scmp.lt.s32.totalorder %s473_s2, %s473_s2 }
  0x32   :  { %349 = vmatprep.subr.mxu0 %v86_v10  ;;  %381 = vmatpush3.msra.mxu1 %v105_v13 }
  0x33   :  { %350 = vmatpush3.msra.mxu0 %v86_v10  ;;  %382 = vmatprep.subr.mxu1 %v104_v15  ;;  %p480_p4 = por %p479_p3, %p478_p2 }
  0x34   :  { %351 = vmatprep.subr.mxu0 %v85_v12  ;;  %383 = vmatpush3.msra.mxu1 %v104_v15 }
  0x35   :  { %352 = vmatpush3.msra.mxu0 %v85_v12  ;;  %384 = vmatprep.subr.mxu1 %v103_v17  ;;  %p481_p5 = pnand %p480_p4, %p474_p1 }
  0x36   :  { %353 = vmatprep.subr.mxu0 %v84_v14  ;;  %385 = vmatpush3.msra.mxu1 %v103_v17 }
  0x37   :  { %354 = vmatpush3.msra.mxu0 %v84_v14  ;;  %386 = vmatprep.subr.mxu1 %v102_v19 }
  0x38   :  { %355 = vmatprep.subr.mxu0 %v83_v16  ;;  %387 = vmatpush3.msra.mxu1 %v102_v19 }
  0x39   :  { %356 = vmatpush3.msra.mxu0 %v83_v16  ;;  %388 = vmatprep.subr.mxu1 %v101_v21 }
  0x3a   :  { %357 = vmatprep.subr.mxu0 %v82_v18  ;;  %389 = vmatpush3.msra.mxu1 %v101_v21 }
  0x3b   :  { %358 = vmatpush3.msra.mxu0 %v82_v18  ;;  %390 = vmatprep.subr.mxu1 %v100_v23 }
  0x3c   :  { %359 = vmatprep.subr.mxu0 %v81_v20  ;;  %391 = vmatpush3.msra.mxu1 %v100_v23 }
  0x3d   :  { %360 = vmatpush3.msra.mxu0 %v81_v20  ;;  %392 = vmatprep.subr.mxu1 %v99_v25 }
  0x3e   :  { %361 = vmatprep.subr.mxu0 %v80_v22  ;;  %393 = vmatpush3.msra.mxu1 %v99_v25 }
  0x3f   :  { %362 = vmatpush3.msra.mxu0 %v80_v22  ;;  %394 = vmatprep.subr.mxu1 %v98_v27 }
  0x40   :  { %363 = vmatprep.subr.mxu0 %v79_v24  ;;  %395 = vmatpush3.msra.mxu1 %v98_v27 }
  0x41   :  { %364 = vmatpush3.msra.mxu0 %v79_v24  ;;  %396 = vmatprep.subr.mxu1 %v97_v30 }
  0x42   :  { %365 = vmatprep.subr.mxu0 %v78_v26  ;;  %397 = vmatpush3.msra.mxu1 %v97_v30 }
  0x43   :  { %366 = vmatpush3.msra.mxu0 %v78_v26  ;;  %398 = vmatprep.subr.mxu1 %v96_v31 }
  0x44   :  { %367 = vmatprep.subr.mxu0 %v77_v28  ;;  %399 = vmatpush3.msra.mxu1 %v96_v31 }
  0x45   :  { %368 = vmatpush3.msra.mxu0 %v77_v28  ;;  %400 = vmatprep.subr.mxu1 %v95_v32 }
  0x46   :  { %370 = vmatmul.mubr.f32.vlgmr.msra.gmra.mxu0 %v76_v29  ;;  %401 = vmatpush3.msra.mxu1 %v95_v32 }
  0x47   :  { %402 = vmatprep.subr.mxu1 %v94_v33 }
  0x48   :  { %403 = vmatpush3.msra.mxu1 %v94_v33 }
 0x106   :  { %v371_v35 = vpop.f32.mrf.mxu0 }
 0x107   :  { %v188_v36 = vadd.f32 %v371_v35, %v300_v34 }
 0x108   :  { %v182_v37 = vpop.f32.mrf.mxu0 }
 0x109   :  { %v183_v38 = vadd.f32 %v300_v34, %v182_v37  ;;  %v192_v40 = vmax.f32 %v188_v36, 0.0 }
 0x10b   :  { %v191_v39 = vmax.f32 %v183_v38, 0.0 }
 0x10d   :  { %404 = vmatprep.mubr.f32.mxu1 %v191_v39 }
 0x10e   :  { %405 = vmatmul.mubr.f32.vlgmr.msra.gmra.mxu1 %v192_v40 }
 0x1ce   :  { %v406_v42 = vpop.f32.mrf.mxu1 }
 0x1cf   :  { %v271_v43 = vadd.f32 %v406_v42, %v299_v41 }
 0x1d0   :  { %v261_v44 = vpop.f32.mrf.mxu1 }
 0x1d1   :  { %280 = vst [vmem:[#allocation9 + $0x8] sm:$0xff] %v271_v43  ;;  %v270_v45 = vadd.f32 %v299_v41, %v261_v44 }
 0x1d3   :  { %279 = vst [vmem:[#allocation9] sm:$0xff] %v270_v45 }
 0x1d4   :  { %484 = shalt.err (!%p481_p5)
}
 0x1d5   :  { %292 = dma.vmem_to_hbm [thread:$0]  %s287_s12, 256, %s570_s5, [#allocation5], %s501_s23, %s501_s23, %s502_s24  }
 0x1d6   :  { %497 = dma.done.wait [#allocation5], 256  }
 0x1d7   :  { %498 = vsyncadd [#allocation5], 4294967040 }
 0x1d8   :  { %296 = vsyncpa [#allocation4], 1 }
 0x1d9   :  { %297 = vsyncpa [#allocation7], 1 }
 0x1da   :  { %298 = vsyncpa [#allocation5], 1 }

</bundles_post_ra>
